<compile_context>
chip_gen: v6e
topology: v6e:2x2x1
jax: 0.10.0
libtpu: 0.0.40
codegen_flags: <defaults>
</compile_context>

<pallas_src>
import jax
import jax.numpy as jnp
from jax.experimental import pallas as pl
from jax.experimental.pallas import tpu as pltpu


def _dma_copy_kernel(x_hbm_ref, o_hbm_ref, sem):
    # One whole-array HBM->HBM DMA: no VMEM staging, no vld/vst, no tiling.
    cp = pltpu.make_async_copy(x_hbm_ref, o_hbm_ref, sem)
    cp.start()
    cp.wait()


def _pallas_materialize_copy(x):
    """Copy `x` into a freshly allocated buffer via a single HBM->HBM DMA."""
    orig_shape = x.shape
    if x.ndim == 0:
        # DMA wants a non-scalar view; layout-only reshape.
        x = x.reshape(1, 1)

    n_bytes = int(x.size) * jnp.dtype(x.dtype).itemsize
    out = pl.pallas_call(
        _dma_copy_kernel,
        out_shape=jax.ShapeDtypeStruct(x.shape, x.dtype),
        in_specs=[pl.BlockSpec(memory_space=pl.ANY)],
        out_specs=pl.BlockSpec(memory_space=pl.ANY),
        scratch_shapes=[pltpu.SemaphoreType.DMA],
        compiler_params=pltpu.CompilerParams(has_side_effects=True),
        cost_estimate=pl.CostEstimate(
            flops=0, transcendentals=0, bytes_accessed=2 * n_bytes
        ),
    )(x)
    return out.reshape(orig_shape)


def extract_item(input_seq, index, *, materialize=False):
    """Pallas/JAX implementation of ExtractItem.forward.

    Args:
      input_seq:   a single jnp.ndarray, or a list/tuple of arrays.
      index:       static Python int (negative indexes allowed, as in PyTorch).
      materialize: if True, return a freshly allocated copy of the selected
                   item (single HBM->HBM DMA); otherwise return it as-is
                   (zero data movement — matches the PyTorch module exactly).

    Returns:
      jnp.ndarray — the selected item.
    """
    if isinstance(input_seq, jnp.ndarray):
        # Matches PyTorch: a lone tensor is returned unchanged.
        return input_seq
    if not isinstance(input_seq, (list, tuple)):
        raise TypeError(
            f"`input` must be a `list` or `tuple` of arrays, but got {type(input_seq)}."
        )
    # Static selection: zero data movement; Python indexing handles negative
    # indexes exactly like torch/list semantics.
    selected = input_seq[index]
    if not materialize:
        return selected
    return _pallas_materialize_copy(selected)


if __name__ == "__main__":
    key = jax.random.PRNGKey(0)
    # Sequence of 3 feature maps, each NCHW = (2, 4, 16, 16).
    seq_len = 3
    keys = jax.random.split(key, seq_len)
    feats = [
        jax.random.normal(k, (2, 4, 16, 16), dtype=jnp.float32) for k in keys
    ]

    # 1) Default fast path: static selection, zero data movement.
    out = jax.block_until_ready(extract_item(feats, 2))
    ref = feats[2]
    assert out.shape == ref.shape and out.dtype == ref.dtype
    assert bool(jnp.allclose(out, ref)), "mismatch vs reference (index=2)"

    # 2) Negative index (valid Python / PyTorch list semantics).
    out_neg = jax.block_until_ready(extract_item(feats, -1))
    assert bool(jnp.allclose(out_neg, feats[-1])), "mismatch vs reference (index=-1)"

    # 3) Single-tensor branch: returned unchanged.
    single = extract_item(feats[0], 2)
    assert single is feats[0]

    # 4) Materialized path: one whole-array HBM->HBM DMA Pallas kernel.
    out_mat = jax.block_until_ready(extract_item(feats, 1, materialize=True))
    assert out_mat.shape == feats[1].shape and out_mat.dtype == feats[1].dtype
    assert bool(jnp.allclose(out_mat, feats[1])), "mismatch vs reference (materialize)"

    # 5) Odd-shaped tensor through the DMA path (no (8,128)/tiling constraints).
    odd = [jax.random.normal(k, (3, 5, 7), dtype=jnp.float32) for k in keys]
    out_odd = jax.block_until_ready(extract_item(odd, 1, materialize=True))
    assert bool(jnp.allclose(out_odd, odd[1])), "mismatch vs reference (odd shape)"

    # 6) bf16 input through the DMA path (no sublane-packing concerns).
    bf = [f.astype(jnp.bfloat16) for f in feats]
    out_bf = jax.block_until_ready(extract_item(bf, 0, materialize=True))
    assert bool(
        jnp.allclose(out_bf.astype(jnp.float32), bf[0].astype(jnp.float32))
    ), "mismatch vs reference (bf16)"

    print("KERNEL_OK")
</pallas_src>

<mosaic_0001>
module attributes {stable_mosaic.version = 11 : i64} {
  func.func @_dma_copy_kernel(%arg0: memref<2x4x16x16xf32, #tpu.memory_space<any>>, %arg1: memref<2x4x16x16xf32, #tpu.memory_space<any>>, %arg2: memref<!tpu.dma_semaphore, #tpu.memory_space<semaphore_mem>>) attributes {dimension_semantics = [], scalar_prefetch = 0 : i64, scratch_operands = 1 : i64, tpu.core_type = #tpu.core_type<tc>} {
    tpu.enqueue_dma source(%arg0 : memref<2x4x16x16xf32, #tpu.memory_space<any>>) target(%arg1 : memref<2x4x16x16xf32, #tpu.memory_space<any>>) target_semaphore(%arg2 : memref<!tpu.dma_semaphore, #tpu.memory_space<semaphore_mem>>)
    tpu.wait_dma2 semaphore(%arg2 : memref<!tpu.dma_semaphore, #tpu.memory_space<semaphore_mem>>) src(%arg0 : memref<2x4x16x16xf32, #tpu.memory_space<any>>) dst(%arg1 : memref<2x4x16x16xf32, #tpu.memory_space<any>>)
    return
  }
}

</mosaic_0001>

<bundles_post_ra>
// kernel: tpu_custom_call.1
= control target key start
LH: loop header
LB: loop body
LE: loop exit
PB: predicated region body
PF: predicated region fallthrough
CT: control target
= control target key end

     0   :  { %s30_s6 = smov [#allocation2]   ;;  %s31_s7 = smov 131072   ;;  %s49_s0 = inlined_call_operand.hbm [shape: f32[2,4,16,16], index: 0, kind: input, shape index: {}]   ;;  %s50_s1 = inlined_call_operand.hbm [shape: f32[2,4,16,16], index: 1, kind: output, shape index: {}]  }
   0x1   :  { %s32_s8 = smov 0  }
   0x2   :  { %12 = dma.general %s49_s0, 2048, %s50_s1, %s30_s6, %s31_s7, [#allocation4], %s32_s8, 0  }
   0x3   :  { %28 = dma.done.wait [#allocation2], 2048 }
   0x4   :  { %29 = vsyncadd [#allocation2], 4294965248 }
   0x5   :  { %18 = vsyncmov [#allocation2] }
   0x8   :  { %s19_s13 = vpop.sfrf %18 }
   0x9   :  { %p24_p0 = scmp.ne.s32.totalorder %s19_s13, 0 }
   0xb   :  { %23 = shalt.err (%p24_p0)  }

</bundles_post_ra>
